<compile_context>
chip_gen: v5e
topology: v5e:2x2
jax: 0.10.0
libtpu: 0.0.40
codegen_flags: <defaults>
</compile_context>

<pallas_src>
import functools
import math

import jax
import jax.numpy as jnp
from jax import lax
from jax.experimental import pallas as pl
from jax.experimental.pallas import tpu as pltpu


_INV_SQRT2 = 1.0 / math.sqrt(2.0)


def _round_up(x, m):
    return ((x + m - 1) // m) * m


def _gelu_exact_f32(x):
    # PyTorch nn.GELU() default: 0.5 * x * (1 + erf(x / sqrt(2)))
    return 0.5 * x * (1.0 + lax.erf(x * _INV_SQRT2))


def _gelu_tanh_f32(x):
    # tanh approximation (runs on the EUP slot).  Only for callers that accept
    # the numeric change vs PyTorch's exact GELU (useful on VALU-bound v7x).
    c = math.sqrt(2.0 / math.pi)
    return 0.5 * x * (1.0 + jnp.tanh(c * (x + 0.044715 * x * x * x)))


def _tpu_generation():
    """(num_tensorcores_per_chip, vmem_capacity_bytes) with safe fallbacks."""
    kind = ""
    try:
        kind = jax.devices()[0].device_kind.lower()
    except Exception:  # pragma: no cover - CPU fallback
        pass
    is_v7 = "v7" in kind
    vmem_cap = (64 << 20) if is_v7 else (128 << 20)
    try:
        vmem_cap = int(pltpu.get_tpu_info().vmem_capacity_bytes)
    except Exception:
        pass
    num_tc = 2 if is_v7 else 1
    return num_tc, vmem_cap


def _pick_tile_h(h_p, cap):
    """Largest multiple-of-128 divisor of h_p that is <= cap (>= 128)."""
    m = h_p // 128
    best = 1
    for d in range(1, m + 1):
        if m % d == 0 and 128 * d <= cap:
            best = d
    return 128 * best


def _cond_embed_kernel(x_ref, w1_ref, b1_ref, w2_ref, b2_ref, o_ref, acc_ref,
                       *, approx_gelu):
    # Grid: (batch tiles ["parallel"], hidden-dim chunks ["arbitrary"]).
    # x_ref:  (tile_b, D_p)   native dtype  (constant across k -> not refetched)
    # w1_ref: (D_p, tile_h)   bf16          b1_ref: (1, tile_h) f32
    # w2_ref: (tile_h, E_p)   bf16          b2_ref: (1, E_p)    f32
    # o_ref:  (tile_b, E_p)   out dtype     acc_ref: (tile_b, E_p) f32 scratch
    k = pl.program_id(1)

    @pl.when(k == 0)
    def _():
        acc_ref[...] = jnp.zeros_like(acc_ref)

    x = x_ref[...].astype(jnp.bfloat16)                      # in-register cast
    h = jnp.dot(x, w1_ref[...], preferred_element_type=jnp.float32)
    h = h + b1_ref[...]                                       # bias in f32
    h = _gelu_tanh_f32(h) if approx_gelu else _gelu_exact_f32(h)
    acc_ref[...] += jnp.dot(h.astype(jnp.bfloat16), w2_ref[...],
                            preferred_element_type=jnp.float32)

    @pl.when(k == pl.num_programs(1) - 1)
    def _():
        o_ref[...] = (acc_ref[...] + b2_ref[...]).astype(o_ref.dtype)


def prepare_condition_embedding_params(w1, b1, w2, b2):
    """Pad feature dims to multiples of 128 and cast MXU operands to bf16.

    Call ONCE and reuse across forward calls (redoing it per call is an extra
    HBM pass over both weight matrices).  Weights are stored (in, out), i.e.
    the transpose of PyTorch nn.Linear's weight.
    """
    D_in, H = w1.shape
    H2, E = w2.shape
    assert H2 == H and b1.shape == (H,) and b2.shape == (E,)
    D_p, H_p, E_p = (_round_up(d, 128) for d in (D_in, H, E))

    w1_p = w1.astype(jnp.bfloat16)
    if (D_p, H_p) != (D_in, H):
        w1_p = jnp.zeros((D_p, H_p), jnp.bfloat16).at[:D_in, :H].set(w1_p)
    w2_p = w2.astype(jnp.bfloat16)
    if (H_p, E_p) != (H, E):
        w2_p = jnp.zeros((H_p, E_p), jnp.bfloat16).at[:H, :E].set(w2_p)
    b1_p = b1.astype(jnp.float32).reshape(1, H)
    if H_p != H:
        b1_p = jnp.zeros((1, H_p), jnp.float32).at[:, :H].set(b1_p)
    b2_p = b2.astype(jnp.float32).reshape(1, E)
    if E_p != E:
        b2_p = jnp.zeros((1, E_p), jnp.float32).at[:, :E].set(b2_p)
    return (w1_p, b1_p, w2_p, b2_p, (D_in, H, E))


def condition_embedding_apply(params, x, *, tile_b=None, tile_h=None,
                              approx_gelu=False):
    """Forward pass given pre-padded params. Returns (B, E) in x.dtype."""
    w1_p, b1_p, w2_p, b2_p, (D_in, H, E) = params
    B, D = x.shape
    assert D == D_in, f"x feature dim {D} != condition_input_dim {D_in}"
    D_p, H_p = w1_p.shape
    H_p2, E_p = w2_p.shape
    assert H_p2 == H_p

    num_tc, vmem_cap = _tpu_generation()
    small_vmem = vmem_cap <= (64 << 20)                 # v7x-class part
    vmem_budget = (40 << 20) if small_vmem else (96 << 20)
    vmem_cap_limit = (48 << 20) if small_vmem else (100 << 20)

    x_itemsize = jnp.dtype(x.dtype).itemsize
    out_dtype = x.dtype
    out_itemsize = jnp.dtype(out_dtype).itemsize

    # Hidden-dim chunk: must divide H_p exactly (it is a reduction axis).
    if tile_h is None:
        tile_h = 2048
    tile_h = _pick_tile_h(H_p, max(128, min(tile_h, H_p)))

    # Batch tile: as large as the VMEM budget allows (fewer grid steps, better
    # DMA overlap); never padded beyond the 8-row sublane granule of B.
    if tile_b is None:
        tile_b = 512 if small_vmem else 1024
    tile_b = min(_round_up(max(16, tile_b), 16), _round_up(B, 8))
    tile_b = max(8, _round_up(tile_b, 8))

    def vmem_bytes(tb, th):
        return (2 * tb * D_p * x_itemsize        # x tiles (double-buffered)
                + 2 * D_p * th * 2               # W1 chunks (bf16, 2 buffers)
                + 2 * th * E_p * 2               # W2 chunks (bf16, 2 buffers)
                + 2 * (th + E_p) * 4             # bias chunks (f32)
                + 2 * tb * E_p * out_itemsize    # out tiles (double-buffered)
                + tb * E_p * 4                   # f32 accumulator scratch
                + tb * th * 6)                   # hidden activation f32 + bf16

    # Shrink hidden chunk first (keeps tile_b big), then the batch tile.
    while vmem_bytes(tile_b, tile_h) > vmem_budget:
        if tile_h > 512:
            tile_h = _pick_tile_h(H_p, tile_h - 128)
        elif tile_b > 256:
            tile_b = max(8, _round_up(tile_b // 2, 8))
        elif tile_h > 128:
            tile_h = _pick_tile_h(H_p, tile_h - 128)
        elif tile_b > 8:
            tile_b = max(8, _round_up(tile_b // 2, 8))
        else:
            break

    # On 2-TensorCore parts make sure the "parallel" batch axis has >= 2 steps.
    if num_tc > 1:
        while tile_b > 8 and pl.cdiv(B, tile_b) < num_tc:
            tile_b = max(8, _round_up(tile_b // 2, 8))

    grid = (pl.cdiv(B, tile_b), H_p // tile_h)

    # x is only padded when D_in is not lane-aligned (feature zero-pad is exact
    # for Linear->GELU->Linear); batch stays un-padded.
    x_in = x
    if D_p != D_in:
        x_in = jnp.zeros((B, D_p), x.dtype).at[:, :D_in].set(x)

    est = vmem_bytes(tile_b, tile_h)
    vmem_limit = int(min(max(2 * est, 32 << 20), vmem_cap_limit))

    cost = pl.CostEstimate(
        flops=2 * B * D_p * H_p + 2 * B * H_p * E_p,
        transcendentals=B * H_p,                       # erf per hidden element
        bytes_accessed=(B * D_p * x_itemsize + D_p * H_p * 2 + H_p * E_p * 2
                        + (H_p + E_p) * 4 + B * E_p * out_itemsize))

    in_specs = [
        pl.BlockSpec((tile_b, D_p), lambda i, k: (i, 0)),   # x (const over k)
        pl.BlockSpec((D_p, tile_h), lambda i, k: (0, k)),   # W1 chunk
        pl.BlockSpec((1, tile_h), lambda i, k: (0, k)),     # b1 chunk
        pl.BlockSpec((tile_h, E_p), lambda i, k: (k, 0)),   # W2 chunk
        pl.BlockSpec((1, E_p), lambda i, k: (0, 0)),        # b2
    ]
    out_specs = pl.BlockSpec((tile_b, E_p), lambda i, k: (i, 0))

    out = pl.pallas_call(
        functools.partial(_cond_embed_kernel, approx_gelu=approx_gelu),
        out_shape=jax.ShapeDtypeStruct((B, E_p), out_dtype),
        grid_spec=pltpu.PrefetchScalarGridSpec(
            num_scalar_prefetch=0,
            grid=grid,
            in_specs=in_specs,
            out_specs=out_specs,
            scratch_shapes=[pltpu.VMEM((tile_b, E_p), jnp.float32)]),
        compiler_params=pltpu.CompilerParams(
            dimension_semantics=("parallel", "arbitrary"),
            vmem_limit_bytes=vmem_limit),
        cost_estimate=cost,
    )(x_in, w1_p, b1_p, w2_p, b2_p)

    if E_p != E:
        out = out[:, :E]
    return out


def condition_embedding(x, w1, b1, w2, b2, **kwargs):
    """Convenience one-shot wrapper (pads weights per call; prefer
    prepare_condition_embedding_params + condition_embedding_apply)."""
    params = prepare_condition_embedding_params(w1, b1, w2, b2)
    return condition_embedding_apply(params, x, **kwargs)


def _init_linear_params(key, fan_in, fan_out):
    """Deterministic init mimicking PyTorch nn.Linear defaults.
    Weight returned as (in, out)."""
    kw, kb = jax.random.split(key)
    bound = 1.0 / math.sqrt(fan_in)
    w = jax.random.uniform(kw, (fan_in, fan_out), jnp.float32,
                           minval=-bound, maxval=bound)
    b = jax.random.uniform(kb, (fan_out,), jnp.float32,
                           minval=-bound, maxval=bound)
    return w, b


def _reference(x, w1, b1, w2, b2):
    h = x @ w1 + b1
    h = 0.5 * h * (1.0 + lax.erf(h / jnp.sqrt(2.0)))
    return h @ w2 + b2


if __name__ == "__main__":
    batch = 8
    condition_input_dim = 32
    condition_embedding_dim = 32          # hidden = 4 * 32 = 128

    key = jax.random.PRNGKey(0)
    kx, k1, k2 = jax.random.split(key, 3)

    x = jax.random.normal(kx, (batch, condition_input_dim), jnp.float32)
    w1, b1 = _init_linear_params(k1, condition_input_dim,
                                 4 * condition_embedding_dim)
    w2, b2 = _init_linear_params(k2, 4 * condition_embedding_dim,
                                 condition_embedding_dim)

    # Pad/cast weights once, reuse for every forward call.
    params = prepare_condition_embedding_params(w1, b1, w2, b2)
    out = condition_embedding_apply(params, x)
    out = jax.block_until_ready(out)

    ref = _reference(x, w1, b1, w2, b2)
    assert out.shape == (batch, condition_embedding_dim)
    # bf16 MXU operands with f32 accumulation -> looser tolerance than pure f32.
    max_err = float(jnp.max(jnp.abs(out - ref)))
    assert jnp.allclose(out, ref, atol=2e-2, rtol=2e-2), (
        f"mismatch vs reference (max abs err {max_err:.3e})")

    print("KERNEL_OK")
</pallas_src>

<mosaic_0001>
module attributes {stable_mosaic.version = 11 : i64} {
  func.func @_cond_embed_kernel(%arg0: i32, %arg1: i32, %arg2: memref<8x128xf32, #tpu.memory_space<vmem>>, %arg3: memref<128x128xbf16, #tpu.memory_space<vmem>>, %arg4: memref<1x128xf32, #tpu.memory_space<vmem>>, %arg5: memref<128x128xbf16, #tpu.memory_space<vmem>>, %arg6: memref<1x128xf32, #tpu.memory_space<vmem>>, %arg7: memref<8x128xf32, #tpu.memory_space<vmem>>, %arg8: memref<8x128xf32, #tpu.memory_space<vmem>>) attributes {dimension_semantics = [#tpu.dimension_semantics<parallel>, #tpu.dimension_semantics<arbitrary>], iteration_bounds = array<i64: 1, 1>, scalar_prefetch = 0 : i64, scratch_operands = 1 : i64, tpu.core_type = #tpu.core_type<tc>, window_params = [{transform_indices = @transform_0, window_bounds = array<i64: 8, 128>}, {transform_indices = @transform_1, window_bounds = array<i64: 128, 128>}, {transform_indices = @transform_2, window_bounds = array<i64: 1, 128>}, {transform_indices = @transform_3, window_bounds = array<i64: 128, 128>}, {pipeline_mode = #tpu.pipeline_mode<synchronous>, transform_indices = @transform_4, window_bounds = array<i64: 1, 128>}, {transform_indices = @transform_5, window_bounds = array<i64: 8, 128>}]} {
    %c0_i32 = arith.constant 0 : i32
    %0 = arith.cmpi eq, %arg1, %c0_i32 : i32
    %1 = arith.extui %0 : i1 to i32
    %c0_i32_0 = arith.constant 0 : i32
    %2 = arith.cmpi ne, %1, %c0_i32_0 : i32
    scf.if %2 {
      %cst_18 = arith.constant 0.000000e+00 : f32
      %27 = vector.broadcast %cst_18 : f32 to vector<8x128xf32>
      %c0_19 = arith.constant 0 : index
      %c0_20 = arith.constant 0 : index
      %28 = vector.load %arg8[%c0_19, %c0_20] : memref<8x128xf32, #tpu.memory_space<vmem>>, vector<8x128xf32>
      tpu.vector_store %arg8[%c0_19, %c0_20], %27 {strides = array<i32>} : memref<8x128xf32, #tpu.memory_space<vmem>>, vector<8x128xf32>,
    } else {
    }
    %c0 = arith.constant 0 : index
    %c0_1 = arith.constant 0 : index
    %3 = vector.load %arg2[%c0, %c0_1] : memref<8x128xf32, #tpu.memory_space<vmem>>, vector<8x128xf32>
    %4 = arith.truncf %3 : vector<8x128xf32> to vector<8x128xbf16>
    %c0_2 = arith.constant 0 : index
    %c0_3 = arith.constant 0 : index
    %5 = vector.load %arg3[%c0_2, %c0_3] : memref<128x128xbf16, #tpu.memory_space<vmem>>, vector<128x128xbf16>
    %cst = arith.constant dense<0.000000e+00> : vector<8x128xf32>
    %6 = tpu.matmul %4, %5, %cst {dimension_numbers = #tpu.dot_dimension_numbers<[1], [0], [0], [1], [0, 0, 1, 1], [], []>} : vector<8x128xbf16>, vector<128x128xbf16>, vector<8x128xf32> -> vector<8x128xf32>
    %c0_4 = arith.constant 0 : index
    %c0_5 = arith.constant 0 : index
    %7 = vector.load %arg4[%c0_4, %c0_5] : memref<1x128xf32, #tpu.memory_space<vmem>>, vector<1x128xf32>
    %8 = vector.broadcast %7 : vector<1x128xf32> to vector<8x128xf32>
    %9 = arith.addf %6, %8 : vector<8x128xf32>
    %cst_6 = arith.constant 5.000000e-01 : f32
    %10 = vector.broadcast %cst_6 : f32 to vector<8x128xf32>
    %11 = arith.mulf %10, %9 : vector<8x128xf32>
    %cst_7 = arith.constant 0.707106769 : f32
    %12 = vector.broadcast %cst_7 : f32 to vector<8x128xf32>
    %13 = arith.mulf %9, %12 : vector<8x128xf32>
    %14 = math.erf %13 : vector<8x128xf32>
    %cst_8 = arith.constant 1.000000e+00 : f32
    %15 = vector.broadcast %cst_8 : f32 to vector<8x128xf32>
    %16 = arith.addf %15, %14 : vector<8x128xf32>
    %17 = arith.mulf %11, %16 : vector<8x128xf32>
    %c0_9 = arith.constant 0 : index
    %c0_10 = arith.constant 0 : index
    %18 = vector.load %arg8[%c0_9, %c0_10] : memref<8x128xf32, #tpu.memory_space<vmem>>, vector<8x128xf32>
    %19 = arith.truncf %17 : vector<8x128xf32> to vector<8x128xbf16>
    %c0_11 = arith.constant 0 : index
    %c0_12 = arith.constant 0 : index
    %20 = vector.load %arg5[%c0_11, %c0_12] : memref<128x128xbf16, #tpu.memory_space<vmem>>, vector<128x128xbf16>
    %cst_13 = arith.constant dense<0.000000e+00> : vector<8x128xf32>
    %21 = tpu.matmul %19, %20, %cst_13 {dimension_numbers = #tpu.dot_dimension_numbers<[1], [0], [0], [1], [0, 0, 1, 1], [], []>} : vector<8x128xbf16>, vector<128x128xbf16>, vector<8x128xf32> -> vector<8x128xf32>
    %22 = arith.addf %18, %21 : vector<8x128xf32>
    %c0_14 = arith.constant 0 : index
    %c0_15 = arith.constant 0 : index
    %23 = vector.load %arg8[%c0_14, %c0_15] : memref<8x128xf32, #tpu.memory_space<vmem>>, vector<8x128xf32>
    tpu.vector_store %arg8[%c0_14, %c0_15], %22 {strides = array<i32>} : memref<8x128xf32, #tpu.memory_space<vmem>>, vector<8x128xf32>,
    %c0_i32_16 = arith.constant 0 : i32
    %24 = arith.cmpi eq, %arg1, %c0_i32_16 : i32
    %25 = arith.extui %24 : i1 to i32
    %c0_i32_17 = arith.constant 0 : i32
    %26 = arith.cmpi ne, %25, %c0_i32_17 : i32
    scf.if %26 {
      %c0_18 = arith.constant 0 : index
      %c0_19 = arith.constant 0 : index
      %27 = vector.load %arg8[%c0_18, %c0_19] : memref<8x128xf32, #tpu.memory_space<vmem>>, vector<8x128xf32>
      %c0_20 = arith.constant 0 : index
      %c0_21 = arith.constant 0 : index
      %28 = vector.load %arg6[%c0_20, %c0_21] : memref<1x128xf32, #tpu.memory_space<vmem>>, vector<1x128xf32>
      %29 = vector.broadcast %28 : vector<1x128xf32> to vector<8x128xf32>
      %30 = arith.addf %27, %29 : vector<8x128xf32>
      %c0_22 = arith.constant 0 : index
      %c0_23 = arith.constant 0 : index
      %31 = vector.load %arg7[%c0_22, %c0_23] : memref<8x128xf32, #tpu.memory_space<vmem>>, vector<8x128xf32>
      tpu.vector_store %arg7[%c0_22, %c0_23], %30 {strides = array<i32>} : memref<8x128xf32, #tpu.memory_space<vmem>>, vector<8x128xf32>,
    } else {
    }
    return
  }
  func.func @transform_0(%arg0: i32, %arg1: i32) -> (i32, i32) {
    %c0_i32 = arith.constant 0 : i32
    %c0_i32_0 = arith.constant 0 : i32
    return %arg0, %c0_i32 : i32, i32
  }
  func.func @transform_1(%arg0: i32, %arg1: i32) -> (i32, i32) {
    %c0_i32 = arith.constant 0 : i32
    %c0_i32_0 = arith.constant 0 : i32
    return %c0_i32, %arg1 : i32, i32
  }
  func.func @transform_2(%arg0: i32, %arg1: i32) -> (i32, i32) {
    %c0_i32 = arith.constant 0 : i32
    %c0_i32_0 = arith.constant 0 : i32
    return %c0_i32, %arg1 : i32, i32
  }
  func.func @transform_3(%arg0: i32, %arg1: i32) -> (i32, i32) {
    %c0_i32 = arith.constant 0 : i32
    %c0_i32_0 = arith.constant 0 : i32
    return %arg1, %c0_i32 : i32, i32
  }
  func.func @transform_4(%arg0: i32, %arg1: i32) -> (i32, i32) {
    %c0_i32 = arith.constant 0 : i32
    %c0_i32_0 = arith.constant 0 : i32
    %c0_i32_1 = arith.constant 0 : i32
    return %c0_i32, %c0_i32_0 : i32, i32
  }
  func.func @transform_5(%arg0: i32, %arg1: i32) -> (i32, i32) {
    %c0_i32 = arith.constant 0 : i32
    %c0_i32_0 = arith.constant 0 : i32
    return %arg0, %c0_i32 : i32, i32
  }
}

</mosaic_0001>

<bundles_post_ra>
// kernel: tpu_custom_call.1
= control target key start
LH: loop header
LB: loop body
LE: loop exit
PB: predicated region body
PF: predicated region fallthrough
CT: control target
= control target key end

     0   :  { %10 = vsyncpa [#allocation4], 0  ;;  %s554_s0 = inlined_call_operand.hbm [shape: f32[8,128], index: 0, kind: input, shape index: {}]   ;;  %s555_s1 = inlined_call_operand.hbm [shape: bf16[128,128], index: 1, kind: input, shape index: {}]   ;;  %s556_s2 = inlined_call_operand.vmem [shape: f32[1,128], index: 2, kind: input, shape index: {}]   ;;  %s557_s3 = inlined_call_operand.hbm [shape: bf16[128,128], index: 3, kind: input, shape index: {}]   ;;  %s558_s4 = inlined_call_operand.vmem [shape: f32[1,128], index: 4, kind: input, shape index: {}]   ;;  %s559_s5 = inlined_call_operand.hbm [shape: f32[8,128], index: 5, kind: output, shape index: {}]  }
   0x1   :  { %11 = vsyncpa [#allocation7], 0  ;;  %s28_s20 = sshll.u32 %s555_s1, 4  ;;  %s29_s20 = int_to_ptr.hbm [resolvable:$true] %s28_s20 }
   0x2   :  { %12 = vsyncpa [#allocation5], 0  ;;  %s500_s21 = smov [#allocation6]   ;;  %s18_s25 = sshll.u32 %s554_s0, 4  ;;  %s19_s25 = int_to_ptr.hbm [resolvable:$true] %s18_s25 }
   0x3   :  { %s30_s22 = sshll.u32 %s500_s21, 4  ;;  %s501_s26 = smov 64   ;;  %s31_s22 = int_to_ptr.vmem [resolvable:$true] %s30_s22 }
   0x4   :  { %s502_s27 = smov 4   ;;  %s503_s28 = smov [#allocation3]  }
   0x5   :  { %36 = dma.hbm_to_vmem [thread:$0]  %s29_s20, 1024, %s31_s22, [#allocation7], %s501_s26, %s501_s26, %s502_s27  }
   0x6   :  { %s20_s29 = sshll.u32 %s503_s28, 4  ;;  %s43_s7 = sshll.u32 %s557_s3, 4  ;;  %s21_s29 = int_to_ptr.vmem [resolvable:$true] %s20_s29  ;;  %s44_s7 = int_to_ptr.hbm [resolvable:$true] %s43_s7 }
   0x7   :  { %23 = dma.hbm_to_vmem [thread:$0]  %s19_s25, 128, %s21_s29, [#allocation4]  }
   0x8   :  { %s504_s1 = smov [#allocation8]  }
   0x9   :  { %s45_s8 = sshll.u32 %s504_s1, 4  ;;  %s46_s8 = int_to_ptr.vmem [resolvable:$true] %s45_s8 }
   0xa   :  { %51 = dma.hbm_to_vmem [thread:$0]  %s44_s7, 1024, %s46_s8, [#allocation7], %s501_s26, %s501_s26, %s502_s27  }
   0xb   :  { %494 = dma.done.wait [#allocation4], 128  }
   0xc   :  { %495 = vsyncadd [#allocation4], 4294967168 }
   0xd   :  { %496 = dma.done.wait [#allocation7], 2048  }
   0xe   :  { %497 = vsyncadd [#allocation7], 4294965248  ;;  %v379_v0 = vld [vmem:[#allocation6 + $0x38] sm:$0xff]  ;;  %v378_v1 = vld [vmem:[#allocation6 + $0x30] sm:$0xff]  ;;  %s505_s10 = smov [#allocation9]   ;;  %s296_s14 = sshll.u32 %s559_s5, 4  ;;  %s297_s14 = int_to_ptr.hbm [resolvable:$true] %s296_s14 }
   0xf   :  { %141 = vmatpush.bf16.msra.mxu0 %v379_v0  ;;  %v377_v2 = vld [vmem:[#allocation6 + $0x28] sm:$0xff]  ;;  %v376_v3 = vld [vmem:[#allocation6 + $0x20] sm:$0xff]  ;;  %v375_v4 = vld [vmem:[#allocation6 + $0x18] sm:$0xff]  ;;  %s294_s11 = sshll.u32 %s505_s10, 4  ;;  %s295_s11 = int_to_ptr.vmem [resolvable:$true] %s294_s11 }
  0x10   :  { %v374_v5 = vld [vmem:[#allocation6 + $0x10] sm:$0xff]  ;;  %v373_v6 = vld [vmem:[#allocation6 + $0x8] sm:$0xff]  ;;  %v372_v7 = vld [vmem:[#allocation6] sm:$0xff] }
  0x11   :  { %v71_v8 = vld [vmem:[#allocation3] sm:$0xff]  ;;  %v386_v11 = vld [vmem:[#allocation8 + $0x30] sm:$0xff]  ;;  %v385_v13 = vld [vmem:[#allocation8 + $0x28] sm:$0xff] }
  0x12   :  { %v72_v9 = vpack.c.bf16 %v71_v8, %v71_v8  ;;  %v387_v10 = vld [vmem:[#allocation8 + $0x38] sm:$0xff]  ;;  %v384_v16 = vld [vmem:[#allocation8 + $0x20] sm:$0xff]  ;;  %v382_v23 = vld [vmem:[#allocation8 + $0x10] sm:$0xff] }
  0x13   :  { %142 = vmatpush.bf16.msra.mxu0 %v378_v1  ;;  %264 = vmatpush.bf16.msra.mxu1 %v387_v10  ;;  %v394_v12 = vld [vmem:[%s556_s2] ss:$0 sm:$0xff]  ;;  %v381_v28 = vld [vmem:[#allocation8 + $0x8] sm:$0xff]  ;;  %v380_v32 = vld [vmem:[#allocation8] sm:$0xff] }
  0x14   :  { %v383_v19 = vld [vmem:[#allocation8 + $0x18] sm:$0xff] }
  0x15   :  { %v395_v62 = vld [vmem:[%s558_s4] ss:$0 sm:$0xff] }
  0x17   :  { %143 = vmatpush.bf16.msra.mxu0 %v377_v2  ;;  %265 = vmatpush.bf16.msra.mxu1 %v386_v11 }
  0x1b   :  { %144 = vmatpush.bf16.msra.mxu0 %v376_v3  ;;  %266 = vmatpush.bf16.msra.mxu1 %v385_v13 }
  0x1f   :  { %145 = vmatpush.bf16.msra.mxu0 %v375_v4  ;;  %267 = vmatpush.bf16.msra.mxu1 %v384_v16 }
  0x23   :  { %146 = vmatpush.bf16.msra.mxu0 %v374_v5  ;;  %268 = vmatpush.bf16.msra.mxu1 %v383_v19 }
  0x27   :  { %147 = vmatpush.bf16.msra.mxu0 %v373_v6  ;;  %269 = vmatpush.bf16.msra.mxu1 %v382_v23 }
  0x2b   :  { %148 = vmatpush.bf16.msra.mxu0 %v372_v7  ;;  %270 = vmatpush.bf16.msra.mxu1 %v381_v28 }
  0x2e   :  { %149 = vmatmul.bf16.vlgmr.msra.gmra.mxu0 %v72_v9 }
  0x2f   :  { %271 = vmatpush.bf16.msra.mxu1 %v380_v32 }
  0xab   :  { %v150_v14 = vpop.f32.mrf.mxu0 }
  0xac   :  { %v151_v15 = vadd.f32 %v394_v12, %v150_v14 }
  0xae   :  { %v155_v17 = vmul.f32 0.70710677, %v151_v15  ;;  %v154_v58 = vmul.f32 0.5, %v151_v15 }
  0xb0   :  { %v156_v18 = vmul.f32 %v155_v17, %v155_v17 }
  0xb2   :  { %v157_v20 = vmin.f32 %v156_v18, 16.0 }
  0xb3   :  { %v152_v21 = vpop.f32.mrf.mxu0 }
  0xb4   :  { %v158_v22 = vmul.f32 2.1237322e-06, %v157_v20  ;;  %v169_v24 = vmul.f32 3.8918573e-05, %v157_v20 }
  0xb6   :  { %v159_v25 = vadd.f32 0.00028619796, %v158_v22  ;;  %v170_v26 = vadd.f32 0.001143296, %v169_v24 }
  0xb8   :  { %v160_v27 = vmul.f32 %v159_v25, %v157_v20  ;;  %v171_v29 = vmul.f32 %v170_v26, %v157_v20 }
  0xba   :  { %v172_v30 = vadd.f32 0.014752088, %v171_v29  ;;  %v161_v31 = vadd.f32 0.0036580483, %v160_v27 }
  0xbc   :  { %v173_v33 = vmul.f32 %v172_v30, %v157_v20  ;;  %v162_v35 = vmul.f32 %v161_v31, %v157_v20 }
  0xbe   :  { %v174_v34 = vadd.f32 0.112945676, %v173_v33  ;;  %v163_v38 = vadd.f32 0.05243302, %v162_v35 }
  0xc0   :  { %v175_v36 = vmul.f32 %v174_v34, %v157_v20  ;;  %v164_v41 = vmul.f32 %v163_v38, %v157_v20 }
  0xc2   :  { %v176_v37 = vadd.f32 0.4994258, %v175_v36  ;;  %v165_v42 = vadd.f32 0.18741608, %v164_v41 }
  0xc4   :  { %v177_v39 = vmul.f32 %v176_v37, %v157_v20  ;;  %v166_v44 = vmul.f32 %v165_v42, %v157_v20 }
  0xc6   :  { %v178_v40 = vadd.f32 1.0, %v177_v39  ;;  %v167_v48 = vadd.f32 1.1283791, %v166_v44 }
  0xc8   :  { %396 = vrcp.f32 %v178_v40  ;;  %v190_v47 = vand.u32 2147483648, %v178_v40  ;;  %v188_v50 = vand.u32 2147483647, %v178_v40  ;;  %vm184_vm1 = vweird.f32 %v178_v40 }
  0xc9   :  { %v168_v53 = vmul.f32 %v167_v48, %v155_v17 }
  0xca   :  { %v191_v52 = vor.u32 1.1754944e-38, %v190_v47  ;;  %vm189_vm3 = vcmp.eq.f32.partialorder %v188_v50, 8.507059e+37 }
  0xce   :  { %v397_v43 = vpop.eup %396 }
  0xcf   :  { %v180_v45 = vmul.f32 %v397_v43, %v178_v40  ;;  %vm185_vm0 = vweird.f32 %v397_v43 }
  0xd0   :  { %vm186_vm2 = vmor %vm184_vm1, %vm185_vm0 }
  0xd1   :  { %v181_v46 = vsub.f32 1.0, %v180_v45 }
  0xd3   :  { %v182_v49 = vmul.f32 %v397_v43, %v181_v46 }
  0xd5   :  { %v183_v51 = vadd.f32 %v397_v43, %v182_v49 }
  0xd7   :  { %v187_v54 = vsel %vm186_vm2, %v397_v43, %v183_v51 }
  0xd8   :  { %v192_v55 = vsel %vm189_vm3, %v191_v52, %v187_v54 }
  0xd9   :  { %v193_v56 = vmul.f32 %v192_v55, %v168_v53 }
  0xdb   :  { %v339_v57 = vclamps-f32 %v193_v56, 1.0 }
  0xdd   :  { %v196_v59 = vadd.f32 1.0, %v339_v57 }
  0xdf   :  { %v197_v60 = vmul.f32 %v196_v59, %v154_v58 }
  0xe1   :  { %v199_v61 = vpack.c.bf16 %v197_v60, %v197_v60 }
  0xe3   :  { %272 = vmatmul.bf16.vlgmr.msra.gmra.mxu1 %v199_v61 }
 0x160   :  { %v273_v63 = vpop.f32.mrf.mxu1 }
 0x161   :  { %v287_v0 = vadd.f32 %v395_v62, %v273_v63 }
 0x163   :  { %288 = vst [vmem:[#allocation9] sm:$0xff] %v287_v0 }
 0x164   :  { %299 = dma.vmem_to_hbm [thread:$0]  %s295_s11, 128, %s297_s14, [#allocation5]  }
 0x168   :  { %v275_v1 = vpop.f32.mrf.mxu1 }
 0x169   :  { %498 = dma.done.wait [#allocation5], 128  }
 0x16a   :  { %499 = vsyncadd [#allocation5], 4294967168 }
 0x16b   :  { %304 = vsyncpa [#allocation4], 1 }
 0x16c   :  { %305 = vsyncpa [#allocation7], 1 }
 0x16d   :  { %306 = vsyncpa [#allocation5], 1 }

</bundles_post_ra>
